<compile_context>
chip_gen: v5e
topology: v5e:2x2
jax: 0.10.0
libtpu: 0.0.40
codegen_flags: <defaults>
</compile_context>

<pallas_src>
import functools

import jax
import jax.numpy as jnp
from jax.experimental import pallas as pl
from jax.experimental.pallas import tpu as pltpu


_MIB = 1024 * 1024


def _round_up(n, m):
    return ((n + m - 1) // m) * m


# ---------------------------------------------------------------------------
# Path A: single-residency kernel.  grid = (B,), one full [C, T] slab / step.
# HBM traffic = 1 read + 1 write.  Two-step (mean, then E[(x-mean)^2]) stats.
# ---------------------------------------------------------------------------
def _normact_single_kernel(alpha_ref, x_ref, gamma_ref, beta_ref, o_ref,
                           *, inv_count, eps):
    x = x_ref[...].astype(jnp.float32)                 # (C, T)
    mean = jnp.sum(x) * inv_count                      # scalar
    d = x - mean
    var = jnp.sum(d * d) * inv_count                   # scalar, no cancellation
    inv_std = 1.0 / jnp.sqrt(var + eps)                # one sqrt+div per batch elem
    scale = gamma_ref[...] * inv_std                   # (C, 1)
    y = scale * d + beta_ref[...]                      # == gamma*normed + beta
    alpha = alpha_ref[0]                               # shared PReLU slope (SMEM)
    o_ref[...] = jnp.where(y >= 0.0, y, alpha * y).astype(o_ref.dtype)


# ---------------------------------------------------------------------------
# Path B: two-phase tiled fallback for slabs that don't fit VMEM.
# Phase 0 streams x tiles, folding 128-lane chunks into (C, 128) partial sum /
# sum-of-squares accumulators (pure VPU adds).  Phase 1 folds gamma/beta/mean/
# inv_std into per-channel scale/shift once, then y = scale*x + shift + PReLU.
# ---------------------------------------------------------------------------
def _normact_tiled_kernel(alpha_ref, x_ref, gamma_ref, beta_ref, o_ref,
                          psum_ref, psq_ref, scale_ref, shift_ref,
                          *, inv_count, eps, lane_chunks):
    p = pl.program_id(1)   # phase: 0 = stats pass, 1 = normalize pass
    t = pl.program_id(2)   # T-tile index

    @pl.when((p == 0) & (t == 0))
    def _init():
        psum_ref[...] = jnp.zeros_like(psum_ref)
        psq_ref[...] = jnp.zeros_like(psq_ref)

    @pl.when(p == 0)
    def _accumulate():
        # Lane-folded vector partials: no XLU tree-reduce, no scalar chain.
        ps = psum_ref[...]
        pq = psq_ref[...]
        for j in range(lane_chunks):
            c = x_ref[:, j * 128:(j + 1) * 128].astype(jnp.float32)  # (C, 128)
            ps = ps + c
            pq = pq + c * c
        psum_ref[...] = ps
        psq_ref[...] = pq

    @pl.when((p == 1) & (t == 0))
    def _finalize_stats():
        # Single cross-lane/sublane reduction per batch element.
        total = jnp.sum(psum_ref[...])
        totsq = jnp.sum(psq_ref[...])
        mean = total * inv_count
        var = jnp.maximum(totsq * inv_count - mean * mean, 0.0)
        inv_std = 1.0 / jnp.sqrt(var + eps)
        scale = gamma_ref[...] * inv_std                 # (C, 1)
        scale_ref[...] = scale
        shift_ref[...] = beta_ref[...] - scale * mean    # (C, 1)

    @pl.when(p == 1)
    def _normalize():
        x = x_ref[...].astype(jnp.float32)               # (C, t_tile)
        y = scale_ref[...] * x + shift_ref[...]          # 2 VALU ops / element
        alpha = alpha_ref[0]
        o_ref[...] = jnp.where(y >= 0.0, y, alpha * y).astype(o_ref.dtype)


def norm_act(x, gamma, beta, alpha, *, force_two_pass=False):
    """GlobLN(+PReLU).  x: [B, C, T]; gamma, beta: [C]; alpha: scalar slope.

    Pass alpha=1.0 for plain GlobLN (no activation), as used by ConvNorm.
    Output dtype follows x.dtype (bf16 in -> bf16 out); compute is f32.
    """
    B, C, T = x.shape
    eps = 1e-8
    inv_count = 1.0 / float(C * T)
    itemsize = jnp.dtype(x.dtype).itemsize

    gamma2 = gamma.reshape(C, 1).astype(jnp.float32)
    beta2 = beta.reshape(C, 1).astype(jnp.float32)
    alpha1 = jnp.asarray(alpha, jnp.float32).reshape(1)

    # ---------------- Path A: whole [C, T] slab per grid step -------------
    slab_io = C * T * itemsize
    slab_f32 = C * T * 4
    # double-buffered in+out pipeline buffers + ~3 f32-slab compute temps
    single_need = 4 * slab_io + 3 * slab_f32
    if (not force_two_pass) and single_need <= 40 * _MIB:
        kernel = functools.partial(_normact_single_kernel,
                                   inv_count=inv_count, eps=eps)
        return pl.pallas_call(
            kernel,
            out_shape=jax.ShapeDtypeStruct((B, C, T), x.dtype),
            grid_spec=pltpu.PrefetchScalarGridSpec(
                num_scalar_prefetch=0,
                grid=(B,),
                in_specs=[
                    pl.BlockSpec(memory_space=pltpu.SMEM),                # alpha
                    pl.BlockSpec((None, C, T), lambda b: (b, 0, 0)),      # x slab
                    pl.BlockSpec((C, 1), lambda b: (0, 0)),               # gamma
                    pl.BlockSpec((C, 1), lambda b: (0, 0)),               # beta
                ],
                out_specs=pl.BlockSpec((None, C, T), lambda b: (b, 0, 0)),
            ),
            compiler_params=pltpu.CompilerParams(
                dimension_semantics=("parallel",),
                vmem_limit_bytes=48 * _MIB,   # > v5e/v6e/v7x scoped defaults, < 64 MiB
            ),
        )(alpha1, x, gamma2, beta2)

    # ---------------- Path B: two-phase tiled fallback ---------------------
    # Lane-dense ~2 MiB x blocks; tile chosen first, T padded to a multiple
    # of the tile (zero pad does not perturb the sums; pad is sliced off).
    target_bytes = 2 * _MIB
    t_tile = (target_bytes // (itemsize * C)) // 128 * 128
    t_tile = max(128, min(t_tile, 4096))
    t_tile = min(t_tile, _round_up(T, 128))
    t_pad = _round_up(T, t_tile)
    n_t = t_pad // t_tile

    x_in = x if t_pad == T else jnp.pad(x, ((0, 0), (0, 0), (0, t_pad - T)))

    kernel = functools.partial(_normact_tiled_kernel, inv_count=inv_count,
                               eps=eps, lane_chunks=t_tile // 128)
    out = pl.pallas_call(
        kernel,
        out_shape=jax.ShapeDtypeStruct((B, C, t_pad), x.dtype),
        grid_spec=pltpu.PrefetchScalarGridSpec(
            num_scalar_prefetch=0,
            grid=(B, 2, n_t),
            in_specs=[
                pl.BlockSpec(memory_space=pltpu.SMEM),                        # alpha
                pl.BlockSpec((None, C, t_tile), lambda b, p, t: (b, 0, t)),   # x tile
                pl.BlockSpec((C, 1), lambda b, p, t: (0, 0)),                 # gamma
                pl.BlockSpec((C, 1), lambda b, p, t: (0, 0)),                 # beta
            ],
            # Phase 0 never writes the output; its block index is parked at
            # (b, 0, 0) and phase 1 fully overwrites that block before the
            # index ever changes, so each output block is flushed exactly
            # once with valid data.  Keep the t axis "arbitrary".
            out_specs=pl.BlockSpec((None, C, t_tile),
                                   lambda b, p, t: (b, 0, t * p)),
            scratch_shapes=[
                pltpu.VMEM((C, 128), jnp.float32),   # partial sum (vector accum)
                pltpu.VMEM((C, 128), jnp.float32),   # partial sum of squares
                pltpu.VMEM((C, 1), jnp.float32),     # scale = gamma * inv_std
                pltpu.VMEM((C, 1), jnp.float32),     # shift = beta - scale*mean
            ],
        ),
        compiler_params=pltpu.CompilerParams(
            dimension_semantics=("parallel", "arbitrary", "arbitrary"),
            vmem_limit_bytes=32 * _MIB,
        ),
    )(alpha1, x_in, gamma2, beta2)

    if t_pad != T:
        out = out[:, :, :T]
    return out


def norm_act_reference(x, gamma, beta, alpha):
    """Pure-JAX reference matching the PyTorch GlobLN forward (+PReLU)."""
    dims = tuple(range(1, x.ndim))
    mean = jnp.mean(x, axis=dims, keepdims=True)
    var = jnp.mean((x - mean) ** 2, axis=dims, keepdims=True)
    normed = (x - mean) / jnp.sqrt(var + 1e-8)
    y = gamma[None, :, None] * normed + beta[None, :, None]
    return jnp.where(y >= 0, y, alpha * y)


if __name__ == "__main__":
    # Small [B, C, T] consistent with the module; T deliberately NOT a
    # multiple of 128 so both the full-block path and the padded tiled path
    # are exercised.
    B, C, T = 2, 8, 300

    key = jax.random.PRNGKey(0)
    kx, kg, kb = jax.random.split(key, 3)
    x = jax.random.normal(kx, (B, C, T), dtype=jnp.float32)

    gamma = jnp.ones((C,), jnp.float32) + 0.1 * jax.random.normal(kg, (C,), jnp.float32)
    beta = 0.1 * jax.random.normal(kb, (C,), jnp.float32)
    alpha = 0.25

    ref = norm_act_reference(x, gamma, beta, alpha)

    # Path A (single-residency, primary).
    out_single = jax.block_until_ready(norm_act(x, gamma, beta, alpha))
    assert out_single.shape == (B, C, T)
    assert jnp.allclose(out_single, ref, atol=2e-5, rtol=2e-5), "single-pass mismatch"

    # Path B (tiled two-phase fallback), forced so it is covered too.
    out_tiled = jax.block_until_ready(
        norm_act(x, gamma, beta, alpha, force_two_pass=True))
    assert out_tiled.shape == (B, C, T)
    assert jnp.allclose(out_tiled, ref, atol=2e-5, rtol=2e-5), "tiled mismatch"

    print("KERNEL_OK")
</pallas_src>

<mosaic_0001>
module attributes {stable_mosaic.version = 11 : i64} {
  func.func @_normact_single_kernel(%arg0: i32, %arg1: memref<1xf32, #tpu.memory_space<smem>>, %arg2: memref<1x8x300xf32, #tpu.memory_space<vmem>>, %arg3: memref<8x1xf32, #tpu.memory_space<vmem>>, %arg4: memref<8x1xf32, #tpu.memory_space<vmem>>, %arg5: memref<1x8x300xf32, #tpu.memory_space<vmem>>) attributes {dimension_semantics = [#tpu.dimension_semantics<parallel>], iteration_bounds = array<i64: 2>, scalar_prefetch = 0 : i64, scratch_operands = 0 : i64, tpu.core_type = #tpu.core_type<tc>, window_params = [{transform_indices = @transform_0, window_bounds = array<i64: 1>}, {transform_indices = @transform_1, window_bounds = array<i64: 1, 8, 300>}, {pipeline_mode = #tpu.pipeline_mode<synchronous>, transform_indices = @transform_2, window_bounds = array<i64: 8, 1>}, {pipeline_mode = #tpu.pipeline_mode<synchronous>, transform_indices = @transform_3, window_bounds = array<i64: 8, 1>}, {transform_indices = @transform_4, window_bounds = array<i64: 1, 8, 300>}]} {
    %c0 = arith.constant 0 : index
    %c0_0 = arith.constant 0 : index
    %c0_1 = arith.constant 0 : index
    %0 = vector.load %arg2[%c0, %c0_0, %c0_1] : memref<1x8x300xf32, #tpu.memory_space<vmem>>, vector<1x8x300xf32>
    %1 = vector.shape_cast %0 : vector<1x8x300xf32> to vector<8x300xf32>
    %2 = vector.shape_cast %1 : vector<8x300xf32> to vector<1x8x300xf32>
    %cst = arith.constant dense<0.000000e+00> : vector<1xf32>
    %3 = vector.multi_reduction <add>, %2, %cst [1, 2] : vector<1x8x300xf32> to vector<1xf32>
    %4 = vector.shape_cast %3 : vector<1xf32> to vector<1x1x1xf32>
    %5 = vector.extract %4[0, 0, 0] : f32 from vector<1x1x1xf32>
    %cst_2 = arith.constant 4.16666677E-4 : f32
    %6 = arith.mulf %5, %cst_2 : f32
    %7 = vector.broadcast %6 : f32 to vector<8x300xf32>
    %8 = arith.subf %1, %7 : vector<8x300xf32>
    %9 = arith.mulf %8, %8 : vector<8x300xf32>
    %10 = vector.shape_cast %9 : vector<8x300xf32> to vector<1x8x300xf32>
    %cst_3 = arith.constant dense<0.000000e+00> : vector<1xf32>
    %11 = vector.multi_reduction <add>, %10, %cst_3 [1, 2] : vector<1x8x300xf32> to vector<1xf32>
    %12 = vector.shape_cast %11 : vector<1xf32> to vector<1x1x1xf32>
    %13 = vector.extract %12[0, 0, 0] : f32 from vector<1x1x1xf32>
    %cst_4 = arith.constant 4.16666677E-4 : f32
    %14 = arith.mulf %13, %cst_4 : f32
    %cst_5 = arith.constant 9.99999993E-9 : f32
    %15 = arith.addf %14, %cst_5 : f32
    %16 = math.sqrt %15 : f32
    %cst_6 = arith.constant 1.000000e+00 : f32
    %17 = arith.divf %cst_6, %16 : f32
    %c0_7 = arith.constant 0 : index
    %c0_8 = arith.constant 0 : index
    %18 = vector.load %arg3[%c0_7, %c0_8] : memref<8x1xf32, #tpu.memory_space<vmem>>, vector<8x1xf32>
    %19 = vector.broadcast %17 : f32 to vector<8x1xf32>
    %20 = arith.mulf %18, %19 : vector<8x1xf32>
    %21 = vector.broadcast %20 : vector<8x1xf32> to vector<8x300xf32>
    %22 = arith.mulf %21, %8 : vector<8x300xf32>
    %c0_9 = arith.constant 0 : index
    %c0_10 = arith.constant 0 : index
    %23 = vector.load %arg4[%c0_9, %c0_10] : memref<8x1xf32, #tpu.memory_space<vmem>>, vector<8x1xf32>
    %24 = vector.broadcast %23 : vector<8x1xf32> to vector<8x300xf32>
    %25 = arith.addf %22, %24 : vector<8x300xf32>
    %c0_11 = arith.constant 0 : index
    %26 = memref.load %arg1[%c0_11] : memref<1xf32, #tpu.memory_space<smem>>
    %cst_12 = arith.constant 0.000000e+00 : f32
    %27 = vector.broadcast %cst_12 : f32 to vector<8x300xf32>
    %28 = arith.cmpf oge, %25, %27 : vector<8x300xf32>
    %29 = vector.broadcast %26 : f32 to vector<8x300xf32>
    %30 = arith.mulf %29, %25 : vector<8x300xf32>
    %31 = arith.select %28, %25, %30 : vector<8x300xi1>, vector<8x300xf32>
    %c0_13 = arith.constant 0 : index
    %c0_14 = arith.constant 0 : index
    %c0_15 = arith.constant 0 : index
    %32 = vector.load %arg5[%c0_13, %c0_14, %c0_15] : memref<1x8x300xf32, #tpu.memory_space<vmem>>, vector<1x8x300xf32>
    %33 = vector.shape_cast %32 : vector<1x8x300xf32> to vector<8x300xf32>
    %34 = vector.shape_cast %31 : vector<8x300xf32> to vector<1x8x300xf32>
    tpu.vector_store %arg5[%c0_13, %c0_14, %c0_15], %34 {strides = array<i32>} : memref<1x8x300xf32, #tpu.memory_space<vmem>>, vector<1x8x300xf32>,
    return
  }
  func.func @transform_0(%arg0: i32) -> i32 {
    %c0_i32 = arith.constant 0 : i32
    %c0_i32_0 = arith.constant 0 : i32
    return %c0_i32 : i32
  }
  func.func @transform_1(%arg0: i32) -> (i32, i32, i32) {
    %c0_i32 = arith.constant 0 : i32
    %c0_i32_0 = arith.constant 0 : i32
    %c0_i32_1 = arith.constant 0 : i32
    return %arg0, %c0_i32, %c0_i32_0 : i32, i32, i32
  }
  func.func @transform_2(%arg0: i32) -> (i32, i32) {
    %c0_i32 = arith.constant 0 : i32
    %c0_i32_0 = arith.constant 0 : i32
    %c0_i32_1 = arith.constant 0 : i32
    return %c0_i32, %c0_i32_0 : i32, i32
  }
  func.func @transform_3(%arg0: i32) -> (i32, i32) {
    %c0_i32 = arith.constant 0 : i32
    %c0_i32_0 = arith.constant 0 : i32
    %c0_i32_1 = arith.constant 0 : i32
    return %c0_i32, %c0_i32_0 : i32, i32
  }
  func.func @transform_4(%arg0: i32) -> (i32, i32, i32) {
    %c0_i32 = arith.constant 0 : i32
    %c0_i32_0 = arith.constant 0 : i32
    %c0_i32_1 = arith.constant 0 : i32
    return %arg0, %c0_i32, %c0_i32_0 : i32, i32, i32
  }
}

</mosaic_0001>

<bundles_post_ra>
// kernel: tpu_custom_call.1
= control target key start
LH: loop header
LB: loop body
LE: loop exit
PB: predicated region body
PF: predicated region fallthrough
CT: control target
= control target key end

     0   :  { %s751_s0 = inlined_call_operand.<no memory space> [shape: f32[1], index: 0, kind: input, shape index: {}]   ;;  %s752_s1 = inlined_call_operand.hbm [shape: f32[2,8,300], index: 1, kind: input, shape index: {}]   ;;  %s753_s2 = inlined_call_operand.vmem [shape: f32[8,1], index: 2, kind: input, shape index: {}]   ;;  %s754_s3 = inlined_call_operand.vmem [shape: f32[8,1], index: 3, kind: input, shape index: {}]   ;;  %s755_s4 = inlined_call_operand.hbm [shape: f32[2,8,300], index: 4, kind: output, shape index: {}]  }
   0x1   :  { %9 = sst [smem:[#allocation2]] %s751_s0 }
   0x2   :  { %10 = vsyncpa [#allocation4], 0 }
   0x3   :  { %12 = vsyncpa [#allocation4 + $0x1], 0 }
   0x4   :  { %13 = vsyncpa [#allocation5], 0 }
   0x5   :  { %15 = vsyncpa [#allocation5 + $0x1], 0  ;;  %s606_s17 = smov 0   ;;  %s608_s18 = smov 0  }
   0x6   :  { %s610_s19 = smov 0   ;;  %s612_s20 = smov 0  }
   0x7 LB: > { %s627_s0 = sadd.s32 4294967295, %s575_s20   ;;  %s406_s21 = sadd.s32 4294967294, %s575_s20   ;;  %s575_s20 = sphi %s612_s20, %s763_s20   ;;  %s571_s19 = sphi %s610_s19, %s762_s19   ;;  %s567_s18 = sphi %s608_s18, %s761_s18   ;;  %s563_s17 = sphi %s606_s17, %s760_s17  }
   0x8   : > { %s631_s22 = sadd.s32 1, %s575_s20   ;;  %s49_s23 = sadd.s32 1, %s571_s19 }
   0x9   : > { %s46_s24 = ssub.s32 %s575_s20, %s631_s22  ;;  %p56_p0 = scmp.ne.s32.totalorder %s571_s19, %s567_s18 }
   0xa   : > { %p47_p1 = scmp.eq.s32.totalorder %s46_s24, 0  ;;  %p57_p2 = scmp.eq.s32.totalorder %s575_s20, 0 }
   0xb   : > { %p62_p3 = scmp.ne.s32.totalorder %s567_s18, %s563_s17  ;;  %p63_p4 = scmp.eq.s32.totalorder %s627_s0, 0 }
   0xc   : > { %s643_s25 = scalar_select %p47_p1, %s571_s19, %s49_s23  }
   0xd   : > { %p58_p5 = por %p57_p2, %p56_p0  ;;  %p645_p6 = por %p63_p4, %p62_p3 }
   0xe   : > { %p128_p7 = scmp.eq.s32.totalorder %s627_s0, 1  ;;  %p134_p8 = scmp.eq.s32.totalorder %s406_s21, 1 }
   0xf   : > { %p408_p9 = scmp.ge.s32.totalorder %s575_s20, 2  ;;  %p438_p10 = scmp.lt.s32.totalorder %s575_s20, 2 }
  0x10   : > { %p652_p11 = por %p128_p7, %p56_p0  ;;  %p656_p12 = por %p134_p8, %p62_p3 }
  0x11   : > { %s163_s29 = sand.u32 1, %s571_s19   ;;  %s415_s30 = smul.u32 24, %s575_s20 }
  0x12   : > { %s414_s5 = smul.u32 24, %s163_s29  ;;  %p665_p13 = pnand %p438_p10, %p58_p5 }
  0x13   : > { %s172_s8 = scalar_lea.hbm %s752_s1, %s415_s30  ;;  %s164_s13 = scalar_lea.sflag [#allocation4], %s163_s29 }
  0x14   : > { %s174_s10 = sshll.u32 %s172_s8, 4  ;;  %s167_s11 = scalar_lea.vmem [#allocation3], %s414_s5  ;;  %s175_s10 = int_to_ptr.hbm [resolvable:$true] %s174_s10 }
  0x15   : > { %s176_s12 = sshll.u32 %s167_s11, 4  ;;  %s479_s14 = sshra.s32 %s175_s10, 4  ;;  %s177_s12 = int_to_ptr.vmem [resolvable:$true] %s176_s12  ;;  %s480_s14 = int_to_ptr.hbm [resolvable:$true] %s479_s14 }
  0x16   : > { %s481_s15 = scalar_lea.hbm %s480_s14, 24  ;;  %p483_p1 = pneg %p665_p13 }
  0x17   : > { %p482_p0 = scmp.ne.s32.totalorder %s480_s14, %s481_s15  ;;  %s486_s23 = scalar_lea.hbm %s752_s1, 48 }
  0x18   : > { %p487_p4 = scmp.lt.s32.totalorder %s480_s14, %s752_s1  ;;  %p488_p5 = scmp.lt.s32.totalorder %s486_s23, %s481_s15 }
  0x19   : > { %p484_p2 = pnand %p483_p1, %p482_p0 }
  0x1a   : > { %p489_p7 = por %p488_p5, %p487_p4 }
  0x1b   : > { %p485_p3 = pneg %p484_p2 }
  0x1d   : > { %p490_p8 = pnand %p489_p7, %p485_p3 }
  0x1f   : > { %493 = shalt.err (!%p490_p8)
}
  0x20   : > { %433 = dma.hbm_to_vmem [thread:$0]  (!%p665_p13), %s175_s10, 384, %s177_s12, %s164_s13  }
  0x21   : > { %p410_p10 = scmp.ge.s32.totalorder %s575_s20, 1  ;;  %p181_p0 = scmp.lt.s32.totalorder %s575_s20, 3 }
  0x23   : > { %p182_p1 = pnand %p410_p10, %p181_p0 }
  0x24   : > { %s682_s29 = sand.u32 (!%p182_p1), 1, %s567_s18  }
  0x25   : > { %185 = sbr.rel (%p182_p1) target bundleno = 695 (0x2b7), region = 36  ;;  %s188_s6 = scalar_lea.sflag (!%p182_p1), [#allocation4], %s682_s29 }
  0x26   : > { %s416_s5 = smul.u32 (!%p182_p1), 24, %s682_s29 }
  0x28   : > { %s191_s7 = scalar_lea.vmem (!%p182_p1), [#allocation3], %s416_s5 }
  0x2a   : > { %554 = dma.done.wait (%p645_p6), %s188_s6, 384  }
  0x2b   : > { %556 = vsyncadd (%p645_p6), %s188_s6, 4294966912  ;;  %vm221_vm0 = vcmask 359424   ;;  %v217_v0 = vld [vmem:[%s191_s7] sm:$0xff]  ;;  %v218_v1 = vld [vmem:[%s191_s7 + $0x8] sm:$0xff]  ;;  %v577_v52 = vmov 0   ;;  %s305_s23 = sld [smem:[#allocation2]] }
  0x2c   : > { %v219_v2 = vld [vmem:[%s191_s7 + $0x10] sm:$0xff]  ;;  %v220_v3 = vadd.f32 %v218_v1, %v217_v0  ;;  %473 = vset.pattern.permute.xlu1 %v577_v52  ;;  %474 = vset.pattern.permute.xlu0 %v577_v52  ;;  %v285_v53 = vld [vmem:[%s753_s2] sm:$0xff]  ;;  %s425_s24 = smul.u32 24, %s627_s0  ;;  %s216_s0 = scalar_lea.vmem [#allocation6], %s416_s5 }
  0x2d   : > { %v222_v4 = vsel %vm221_vm0, %v219_v2, 0.0  ;;  %v296_v56 = vld [vmem:[%s754_s3] sm:$0xff]  ;;  %s529_s13 = scalar_lea.hbm %s755_s4, 48 }
  0x2e   : > { %v223_v5 = vadd.f32 %v222_v4, %v220_v3  ;;  %s331_s7 = scalar_lea.hbm %s755_s4, %s425_s24 }
  0x30   : > { %224 = vadd.xlane.f32.xlu0 %v223_v5 }
  0x31   : > { %v309_v61 = vstv %s305_s23 }
  0xa3   : > { %v225_v6 = vpop.xlane.xlu0 %224 }
  0xa4   : > { %v226_v7 = vrot.slane %v225_v6, 4 }
  0xa6   : > { %v227_v8 = vadd.f32 %v226_v7, %v225_v6 }
  0xa8   : > { %v228_v9 = vrot.slane %v227_v8, 2 }
  0xaa   : > { %v229_v10 = vadd.f32 %v228_v9, %v227_v8 }
  0xac   : > { %v230_v11 = vrot.slane %v229_v10, 1 }
  0xae   : > { %v231_v12 = vadd.f32 %v230_v11, %v229_v10 }
  0xb0   : > { %417 = vpush %v231_v12 }
  0xe1   : > { %s418_s8 = spop %417 }
  0xe2   : > { %s233_s26 = smul.f32 0.00041666668, %s418_s8  ;;  %s333_s8 = sshll.u32 %s216_s0, 4  ;;  %s334_s8 = int_to_ptr.vmem [resolvable:$true] %s333_s8 }
  0xe4   : > { %v234_v13 = vstv %s233_s26  ;;  %s335_s26 = sshll.u32 %s331_s7, 4  ;;  %s336_s26 = int_to_ptr.hbm [resolvable:$true] %s335_s26 }
  0xe5   : > { %v693_v14 = vsub.f32 %v217_v0, %v234_v13  ;;  %v695_v15 = vsub.f32 %v218_v1, %v234_v13  ;;  %v697_v16 = vsub.f32 %v219_v2, %v234_v13 }
  0xe7   : > { %v238_v17 = vmul.f32 %v693_v14, %v693_v14  ;;  %v239_v18 = vmul.f32 %v695_v15, %v695_v15  ;;  %v240_v19 = vmul.f32 %v697_v16, %v697_v16 }
  0xe9   : > { %v241_v20 = vadd.f32 %v239_v18, %v238_v17  ;;  %v242_v21 = vsel %vm221_vm0, %v240_v19, 0.0 }
  0xeb   : > { %v243_v22 = vadd.f32 %v242_v21, %v241_v20 }
  0xed   : > { %244 = vadd.xlane.f32.xlu0 %v243_v22 }
 0x160   : > { %v245_v23 = vpop.xlane.xlu0 %244 }
 0x161   : > { %v246_v24 = vrot.slane %v245_v23, 4 }
 0x163   : > { %v247_v25 = vadd.f32 %v246_v24, %v245_v23 }
 0x165   : > { %v248_v26 = vrot.slane %v247_v25, 2 }
 0x167   : > { %v249_v27 = vadd.f32 %v248_v26, %v247_v25 }
 0x169   : > { %v250_v28 = vrot.slane %v249_v27, 1 }
 0x16b   : > { %v251_v29 = vadd.f32 %v250_v28, %v249_v27 }
 0x16d   : > { %419 = vpush %v251_v29 }
 0x19e   : > { %s420_s9 = spop %419 }
 0x19f   : > { %s253_s10 = smul.f32 0.00041666668, %s420_s9  ;;  %s320_s9 = scalar_lea.sflag [#allocation5], %s682_s29 }
 0x1a1   : > { %s254_s11 = sadd.f32 1e-08, %s253_s10  ;;  %s523_s10 = sshra.s32 %s336_s26, 4  ;;  %s524_s10 = int_to_ptr.hbm [resolvable:$true] %s523_s10 }
 0x1a2   : > { %p530_p3 = scmp.lt.s32.totalorder %s524_s10, %s755_s4 }
 0x1a3   : > { %v255_v30 = vstv %s254_s11  ;;  %s525_s11 = scalar_lea.hbm %s524_s10, 24 }
 0x1a4   : > { %475 = vrsqrt.f32 %v255_v30  ;;  %vm263_vm1 = vcmp.eq.f32.partialorder %v255_v30, inf  ;;  %v266_v38 = vand.u32 2147483648, %v255_v30  ;;  %vm265_vm2 = vcmp.eq.f32.partialorder %v255_v30, 0.0  ;;  %p526_p6 = scmp.ne.s32.totalorder %s524_s10, %s525_s11  ;;  %p531_p4 = scmp.lt.s32.totalorder %s529_s13, %s525_s11 }
 0x1a6   : > { %p527_p13 = pnand %p526_p6, %p652_p11  ;;  %p532_p5 = por %p531_p4, %p530_p3 }
 0x1a8   : > { %p528_p2 = pneg %p527_p13 }
 0x1aa   : > { %v476_v31 = vpop.eup %475  ;;  %p533_p7 = pnand %p532_p5, %p528_p2 }
 0x1ab   : > { %v257_v32 = vmul.f32 %v476_v31, %v255_v30 }
 0x1ad   : > { %v258_v33 = vmul.f32 %v476_v31, %v257_v32 }
 0x1af   : > { %v259_v34 = vmul.f32 0.5, %v258_v33 }
 0x1b1   : > { %v260_v35 = vsub.f32 1.5, %v259_v34 }
 0x1b3   : > { %v261_v36 = vmul.f32 %v476_v31, %v260_v35 }
 0x1b5   : > { %v262_v37 = vmul.f32 %v261_v36, %v255_v30 }
 0x1b7   : > { %v264_v39 = vsel %vm263_vm1, %v255_v30, %v262_v37 }
 0x1b8   : > { %v267_v40 = vsel %vm265_vm2, %v266_v38, %v264_v39 }
 0x1b9   : > { %421 = vpush %v267_v40 }
 0x1ea   : > { %s422_s12 = spop %421 }
 0x1eb   : > { %v269_v41 = vstv %s422_s12 }
 0x1ec   : > { %477 = vrcp.f32 %v269_v41  ;;  %v281_v45 = vand.u32 2147483648, %v269_v41  ;;  %v279_v47 = vand.u32 2147483647, %v269_v41  ;;  %vm275_vm4 = vweird.f32 %v269_v41 }
 0x1ee   : > { %v282_v49 = vor.u32 1.1754944e-38, %v281_v45  ;;  %vm280_vm6 = vcmp.eq.f32.partialorder %v279_v47, 8.507059e+37 }
 0x1f2   : > { %v478_v42 = vpop.eup %477 }
 0x1f3   : > { %v271_v43 = vmul.f32 %v478_v42, %v269_v41  ;;  %vm276_vm3 = vweird.f32 %v478_v42 }
 0x1f4   : > { %vm277_vm5 = vmor %vm275_vm4, %vm276_vm3 }
 0x1f5   : > { %v272_v44 = vsub.f32 1.0, %v271_v43 }
 0x1f7   : > { %v273_v46 = vmul.f32 %v478_v42, %v272_v44 }
 0x1f9   : > { %v274_v48 = vadd.f32 %v478_v42, %v273_v46 }
 0x1fb   : > { %v278_v50 = vsel %vm277_vm5, %v478_v42, %v274_v48 }
 0x1fc   : > { %v283_v51 = vsel %vm280_vm6, %v282_v49, %v278_v50 }
 0x1fd   : > { %423 = vpush %v283_v51 }
 0x22e   : > { %s424_s15 = spop %423 }
 0x22f   : > { %v286_v54 = vstv %s424_s15 }
 0x230   : > { %v287_v55 = vmul.f32 %v286_v54, %v285_v53 }
 0x232   : > { %290 = vperm.xlu1 %473, %v287_v55  }
 0x23a   : > { %299 = vperm.xlu1 %473, %v296_v56  }
 0x2a4   : > { %v291_v57 = vpop.permute.xlu1 %290 }
 0x2a5   : > { %v293_v58 = vmul.f32 %v291_v57, %v693_v14  ;;  %v294_v59 = vmul.f32 %v291_v57, %v695_v15  ;;  %v295_v60 = vmul.f32 %v291_v57, %v697_v16 }
 0x2ac   : > { %v300_v62 = vpop.permute.xlu1 %299 }
 0x2ad   : > { %v302_v63 = vadd.f32 %v300_v62, %v293_v58  ;;  %v303_v0 = vadd.f32 %v300_v62, %v294_v59  ;;  %v304_v1 = vadd.f32 %v300_v62, %v295_v60 }
 0x2af   : > { %vm306_vm7 = vcmp.ge.f32.partialorder %v302_v63, 0.0  ;;  %vm307_vm8 = vcmp.ge.f32.partialorder %v303_v0, 0.0  ;;  %vm308_vm9 = vcmp.ge.f32.partialorder %v304_v1, 0.0  ;;  %v310_v2 = vmul.f32 %v309_v61, %v302_v63 }
 0x2b0   : > { %v311_v3 = vmul.f32 %v309_v61, %v303_v0  ;;  %v312_v4 = vmul.f32 %v309_v61, %v304_v1 }
 0x2b1   : > { %v313_v5 = vsel %vm306_vm7, %v302_v63, %v310_v2 }
 0x2b2   : > { %v314_v6 = vsel %vm307_vm8, %v303_v0, %v311_v3  ;;  %v315_v7 = vsel %vm308_vm9, %v304_v1, %v312_v4  ;;  %316 = vst [vmem:[%s216_s0] sm:$0xff] %v313_v5 }
 0x2b3   : > { %317 = vst [vmem:[%s216_s0 + $0x8] sm:$0xff] %v314_v6 }
 0x2b4   : > { %318 = vst.msk [vmem:[%s216_s0 + $0x10] sm:$0xff] %vm221_vm0, %v315_v7 }
 0x2b5   : > { %536 = shalt.err (!%p533_p7)
}
 0x2b6   : > { %428 = dma.vmem_to_hbm [thread:$0]  (%p652_p11), %s334_s8, 384, %s336_s26, %s320_s9  }
 0x2b7 PF: > { %s347_s29 = sand.u32 1, %s563_s17   ;;  %p435_p8 = pnand %p408_p9, %p656_p12 }
 0x2b8   : > { %s348_s16 = scalar_lea.sflag [#allocation5], %s347_s29 }
 0x2b9   : > { %p436_p10 = pneg %p435_p8 }
 0x2bb   : > { %558 = dma.done.wait (%p436_p10), %s348_s16, 384  }
 0x2bc   : > { %560 = vsyncadd (%p436_p10), %s348_s16, 4294966912  ;;  %p18_p0 = scmp.ge.s32.totalorder %s631_s22, 4   ;;  %s760_s17 = smov %s567_s18 }
 0x2bd   : > { %s761_s18 = smov %s571_s19  ;;  %s762_s19 = smov %s643_s25 }
 0x2be   : > { %s763_s20 = smov %s631_s22  ;;  %20 = sbr.rel (!%p18_p0) target bundleno = 7 (0x7), region = 81 }
 0x2c3   :  { %354 = vsyncpa [#allocation4], 1 }
 0x2c4   :  { %356 = vsyncpa [#allocation4 + $0x1], 1 }
 0x2c5   :  { %357 = vsyncpa [#allocation5], 1 }
 0x2c6   :  { %359 = vsyncpa [#allocation5 + $0x1], 1 }

</bundles_post_ra>
